<compile_context>
chip_gen: v7x
topology: tpu7x:2x2x1
jax: 0.10.0
libtpu: 0.0.40
codegen_flags: <defaults>
</compile_context>

<pallas_src>
import jax
import jax.numpy as jnp
from jax.experimental import pallas as pl
from jax.experimental.pallas import tpu as pltpu

LN_EPS = 1e-5  # nn.LayerNorm default eps


# ---------------------------------------------------------------------------
# Pallas kernel: LayerNorm over the channel (sublane) axis of (Bblk, C, T)
# ---------------------------------------------------------------------------
def _channel_ln_kernel(x_ref, g_ref, b_ref, o_ref):
    g = g_ref[...].astype(jnp.float32)            # (C, 1), lane-broadcast
    b = b_ref[...].astype(jnp.float32)            # (C, 1)
    inv_c = 1.0 / x_ref.shape[1]
    # Bblk is a small static int -> unrolled at trace time.
    for i in range(x_ref.shape[0]):
        x = x_ref[i].astype(jnp.float32)          # (C, T): C sublanes, T lanes
        # Single pass: mean and E[x^2] together.
        mu = jnp.sum(x, axis=0, keepdims=True) * inv_c          # (1, T)
        ex2 = jnp.sum(x * x, axis=0, keepdims=True) * inv_c     # (1, T)
        var = ex2 - mu * mu                                     # biased var
        inv_std = jax.lax.rsqrt(var + LN_EPS)                   # EUP rsqrt
        o_ref[i] = ((x - mu) * inv_std * g + b).astype(o_ref.dtype)


# ---------------------------------------------------------------------------
# Tile chooser: lane-dense T sized by VMEM budget, batch-widened for small HW
# ---------------------------------------------------------------------------
def _choose_tiles(B, C, HW, itemsize):
    # Per lane-column bytes for one batch element per step:
    #   2 double-buffers each for the input and output blocks (4 * itemsize)
    #   plus ~2 f32 temporaries from the upcast / centered copy (8 bytes).
    bytes_per_lane = C * (4 * itemsize + 8)
    budget = 10 * 1024 * 1024  # fits v5e's 16 MiB default scoped VMEM w/ headroom

    if HW < 128:
        # Full extent (= array dim, legal); sub-128 lanes, compensated below
        # by widening the batch block.
        T = HW
    else:
        t_fit = max(128, (budget // bytes_per_lane) // 128 * 128)
        T = int(min(2048, t_fit, (HW // 128) * 128))

    # Widen the batch block so each step moves enough data to hide the
    # ~600-cycle per-step overhead, without blowing the VMEM budget.
    target_lanes = 2048
    bblk = max(1, min(B, target_lanes // max(T, 1)))
    bblk = max(1, min(bblk, int(budget // max(T * bytes_per_lane, 1))))
    # Keep at least 2 grid steps when possible so v7x's 2nd TensorCore works.
    while bblk > 1 and pl.cdiv(B, bblk) * pl.cdiv(HW, T) < 2:
        bblk -= 1
    return bblk, T


# ---------------------------------------------------------------------------
# Wrapper
# ---------------------------------------------------------------------------
def channel_layernorm(x, gamma, beta):
    """x: (B, C, H, W) f32/bf16; gamma, beta: (C,).  Returns (B, C, H, W).

    Best layout efficiency when C is a multiple of 8 (f32) / 16 (bf16);
    smaller C still runs correctly (padded sublanes).
    """
    B, C, H, W = x.shape
    HW = H * W
    itemsize = jnp.dtype(x.dtype).itemsize
    Bblk, T = _choose_tiles(B, C, HW, itemsize)

    x2 = x.reshape(B, C, HW)            # free reshape, no data movement
    g2 = gamma.reshape(C, 1)
    b2 = beta.reshape(C, 1)

    cost = pl.CostEstimate(
        flops=10 * B * C * HW,
        transcendentals=B * HW,
        bytes_accessed=2 * B * C * HW * itemsize + 2 * C * 4,
    )

    out = pl.pallas_call(
        _channel_ln_kernel,
        out_shape=jax.ShapeDtypeStruct((B, C, HW), x.dtype),
        grid_spec=pltpu.PrefetchScalarGridSpec(
            num_scalar_prefetch=0,
            grid=(pl.cdiv(B, Bblk), pl.cdiv(HW, T)),
            in_specs=[
                pl.BlockSpec((Bblk, C, T), lambda b, t: (b, 0, t)),
                pl.BlockSpec((C, 1), lambda b, t: (0, 0)),
                pl.BlockSpec((C, 1), lambda b, t: (0, 0)),
            ],
            out_specs=pl.BlockSpec((Bblk, C, T), lambda b, t: (b, 0, t)),
        ),
        compiler_params=pltpu.CompilerParams(
            dimension_semantics=("parallel", "parallel")),
        cost_estimate=cost,
    )(x2, g2, b2)
    return out.reshape(B, C, H, W)


# ---------------------------------------------------------------------------
# pure-JAX reference (mirrors the PyTorch module exactly)
# ---------------------------------------------------------------------------
def channel_layernorm_ref(x, gamma, beta):
    xh = jnp.transpose(x, (0, 2, 3, 1))                     # NCHW -> NHWC
    mu = jnp.mean(xh, axis=-1, keepdims=True)
    var = jnp.mean((xh - mu) ** 2, axis=-1, keepdims=True)
    y = (xh - mu) * jax.lax.rsqrt(var + LN_EPS) * gamma + beta
    return jnp.transpose(y, (0, 3, 1, 2))                   # NHWC -> NCHW


if __name__ == "__main__":
    B, C, H, W = 2, 4, 16, 16
    key = jax.random.PRNGKey(0)
    k_x, k_g, k_b = jax.random.split(key, 3)
    x = jax.random.normal(k_x, (B, C, H, W), jnp.float32)
    gamma = 1.0 + 0.1 * jax.random.normal(k_g, (C,), jnp.float32)
    beta = 0.1 * jax.random.normal(k_b, (C,), jnp.float32)

    fwd = jax.jit(channel_layernorm)
    out = fwd(x, gamma, beta)
    jax.block_until_ready(out)

    assert out.shape == (B, C, H, W), out.shape
    assert bool(jnp.all(jnp.isfinite(out)))

    ref = channel_layernorm_ref(x, gamma, beta)
    assert bool(jnp.allclose(out, ref, atol=1e-5, rtol=1e-5))
    print("KERNEL_OK")
</pallas_src>

<mosaic_0001>
module attributes {stable_mosaic.version = 11 : i64} {
  func.func @_channel_ln_kernel(%arg0: i32, %arg1: i32, %arg2: memref<1x4x256xf32, #tpu.memory_space<vmem>>, %arg3: memref<4x1xf32, #tpu.memory_space<vmem>>, %arg4: memref<4x1xf32, #tpu.memory_space<vmem>>, %arg5: memref<1x4x256xf32, #tpu.memory_space<vmem>>) attributes {dimension_semantics = [#tpu.dimension_semantics<parallel>, #tpu.dimension_semantics<parallel>], iteration_bounds = array<i64: 2, 1>, scalar_prefetch = 0 : i64, scratch_operands = 0 : i64, tpu.core_type = #tpu.core_type<tc>, window_params = [{transform_indices = @transform_0, window_bounds = array<i64: 1, 4, 256>}, {pipeline_mode = #tpu.pipeline_mode<synchronous>, transform_indices = @transform_1, window_bounds = array<i64: 4, 1>}, {pipeline_mode = #tpu.pipeline_mode<synchronous>, transform_indices = @transform_2, window_bounds = array<i64: 4, 1>}, {transform_indices = @transform_3, window_bounds = array<i64: 1, 4, 256>}]} {
    %c0 = arith.constant 0 : index
    %c0_0 = arith.constant 0 : index
    %0 = vector.load %arg3[%c0, %c0_0] : memref<4x1xf32, #tpu.memory_space<vmem>>, vector<4x1xf32>
    %c0_1 = arith.constant 0 : index
    %c0_2 = arith.constant 0 : index
    %1 = vector.load %arg4[%c0_1, %c0_2] : memref<4x1xf32, #tpu.memory_space<vmem>>, vector<4x1xf32>
    %c0_3 = arith.constant 0 : index
    %c0_4 = arith.constant 0 : index
    %c0_5 = arith.constant 0 : index
    %2 = vector.load %arg2[%c0_3, %c0_4, %c0_5] : memref<1x4x256xf32, #tpu.memory_space<vmem>>, vector<1x4x256xf32>
    %3 = vector.shape_cast %2 : vector<1x4x256xf32> to vector<4x256xf32>
    %cst = arith.constant dense<0.000000e+00> : vector<256xf32>
    %4 = vector.multi_reduction <add>, %3, %cst [0] : vector<4x256xf32> to vector<256xf32>
    %5 = vector.shape_cast %4 : vector<256xf32> to vector<1x256xf32>
    %cst_6 = arith.constant 2.500000e-01 : f32
    %6 = vector.broadcast %cst_6 : f32 to vector<1x256xf32>
    %7 = arith.mulf %5, %6 : vector<1x256xf32>
    %8 = arith.mulf %3, %3 : vector<4x256xf32>
    %cst_7 = arith.constant dense<0.000000e+00> : vector<256xf32>
    %9 = vector.multi_reduction <add>, %8, %cst_7 [0] : vector<4x256xf32> to vector<256xf32>
    %10 = vector.shape_cast %9 : vector<256xf32> to vector<1x256xf32>
    %cst_8 = arith.constant 2.500000e-01 : f32
    %11 = vector.broadcast %cst_8 : f32 to vector<1x256xf32>
    %12 = arith.mulf %10, %11 : vector<1x256xf32>
    %13 = arith.mulf %7, %7 : vector<1x256xf32>
    %14 = arith.subf %12, %13 : vector<1x256xf32>
    %cst_9 = arith.constant 9.99999974E-6 : f32
    %15 = vector.broadcast %cst_9 : f32 to vector<1x256xf32>
    %16 = arith.addf %14, %15 : vector<1x256xf32>
    %17 = math.rsqrt %16 : vector<1x256xf32>
    %18 = vector.broadcast %7 : vector<1x256xf32> to vector<4x256xf32>
    %19 = arith.subf %3, %18 : vector<4x256xf32>
    %20 = vector.broadcast %17 : vector<1x256xf32> to vector<4x256xf32>
    %21 = arith.mulf %19, %20 : vector<4x256xf32>
    %22 = vector.broadcast %0 : vector<4x1xf32> to vector<4x256xf32>
    %23 = arith.mulf %21, %22 : vector<4x256xf32>
    %24 = vector.broadcast %1 : vector<4x1xf32> to vector<4x256xf32>
    %25 = arith.addf %23, %24 : vector<4x256xf32>
    %c0_10 = arith.constant 0 : index
    %c0_11 = arith.constant 0 : index
    %c0_12 = arith.constant 0 : index
    %26 = vector.load %arg5[%c0_10, %c0_11, %c0_12] : memref<1x4x256xf32, #tpu.memory_space<vmem>>, vector<1x4x256xf32>
    %27 = vector.shape_cast %26 : vector<1x4x256xf32> to vector<4x256xf32>
    %28 = vector.shape_cast %25 : vector<4x256xf32> to vector<1x4x256xf32>
    tpu.vector_store %arg5[%c0_10, %c0_11, %c0_12], %28 {strides = array<i32>} : memref<1x4x256xf32, #tpu.memory_space<vmem>>, vector<1x4x256xf32>,
    return
  }
  func.func @transform_0(%arg0: i32, %arg1: i32) -> (i32, i32, i32) {
    %c0_i32 = arith.constant 0 : i32
    %c0_i32_0 = arith.constant 0 : i32
    return %arg0, %c0_i32, %arg1 : i32, i32, i32
  }
  func.func @transform_1(%arg0: i32, %arg1: i32) -> (i32, i32) {
    %c0_i32 = arith.constant 0 : i32
    %c0_i32_0 = arith.constant 0 : i32
    %c0_i32_1 = arith.constant 0 : i32
    return %c0_i32, %c0_i32_0 : i32, i32
  }
  func.func @transform_2(%arg0: i32, %arg1: i32) -> (i32, i32) {
    %c0_i32 = arith.constant 0 : i32
    %c0_i32_0 = arith.constant 0 : i32
    %c0_i32_1 = arith.constant 0 : i32
    return %c0_i32, %c0_i32_0 : i32, i32
  }
  func.func @transform_3(%arg0: i32, %arg1: i32) -> (i32, i32, i32) {
    %c0_i32 = arith.constant 0 : i32
    %c0_i32_0 = arith.constant 0 : i32
    return %arg0, %c0_i32, %arg1 : i32, i32, i32
  }
}

</mosaic_0001>

<bundles_post_ra>
// kernel: channel_layernorm.1
= control target key start
LH: loop header
LB: loop body
LE: loop exit
PB: predicated region body
PF: predicated region fallthrough
CT: control target
= control target key end

     0   :  { %s476_s12 = smov 0   ;;  %s478_s13 = smov 0   ;;  %s522_s0 = inlined_call_operand.vmem [shape: f32[2,4,256], index: 0, kind: input, shape index: {}]   ;;  %s523_s1 = inlined_call_operand.vmem [shape: f32[4,1], index: 1, kind: input, shape index: {}]   ;;  %s524_s2 = inlined_call_operand.vmem [shape: f32[4,1], index: 2, kind: input, shape index: {}]   ;;  %s525_s3 = inlined_call_operand.vmem [shape: f32[2,4,256], index: 3, kind: output, shape index: {}]  }
   0x1   :  { %s480_s14 = smov 0  }
   0x2 LB: > { %s25_s15 = sadd.s32 1, %s448_s13  ;;  %p389_p0 = scmp.ge.s32.totalorder %s452_s14, 1  ;;  %s452_s14 = sphi %s480_s14, %s13_s14   ;;  %s448_s13 = sphi %s478_s13, %s527_s13   ;;  %s444_s12 = sphi %s476_s12, %s526_s12  }
   0x3   : > { %p27_p1 = scmp.ge.s32.totalorder %s25_s15, 2  ;;  %p158_p2 = scmp.lt.s32.totalorder %s452_s14, 3 }
   0x5   : > { %s529_s15 = smov (%p27_p1, %s25_s15), 0  ;;  %p159_p3 = pnand %p389_p0, %p158_p2 }
   0x6   : > { %v210_v0 = vld [vmem:[%s523_s1] sm:$0xf] (!%p159_p3)  ;;  %v454_v1 = vmov (!%p159_p3), 0   ;;  %p191_p4 = scmp.lt.s32.totalorder (!%p159_p3), %s444_s12, 1  ;;  %vm216_vm0 = vcmask (!%p159_p3), 1043456   ;;  %v278_v47 = vlaneseq (!%p159_p3) }
   0x7   : > { %162 = sbr.rel (%p159_p3) target bundleno = 145 (0x91), region = 32  ;;  %424 = vset.pattern.permute.xlu0 (!%p159_p3), %v454_v1  ;;  %v211_v2 = vld [vmem:[%s524_s2] sm:$0xf] (!%p159_p3)  ;;  %v455_v45 = vmov (!%p159_p3), 839922192  }
   0x8   : > { %273 = vperm.xlu0 (!%p159_p3), %424, %v210_v0   ;;  %v276_v46 = vunpack.c.l.s4 (!%p159_p3), %v455_v45  ;;  %v279_v50 = vshrl.u32 (!%p159_p3), %v278_v47, 7 }
   0xa   : > { %v277_v49 = vunpack.c.0.s8 (!%p159_p3), %v276_v46 }
   0xc   : > { %286 = vperm.xlu0 (!%p159_p3), %424, %v211_v2   ;;  %v280_v53 = vsub.s32 (!%p159_p3), %v277_v49, %v279_v50 }
   0xe   : > { %s531_s12 = smov (!%p191_p4, %s444_s12), 1 }
   0xf   : > { %s396_s20 = sshll.u32 %s531_s12, 3 }
  0x10   : > { %s198_s23 = scalar_lea.vmem %s522_s0, %s396_s20  ;;  %s208_s26 = scalar_lea.vmem %s525_s3, %s396_s20 }
  0x11   : > { %v212_v3 = vld [vmem:[%s198_s23] sm:$0xff] }
  0x12   : > { %v214_v4 = vcombine.high %v212_v3, %v212_v3  ;;  %v233_v5 = vmul.f32 %v212_v3, %v212_v3  ;;  %v217_v6 = vsel %vm216_vm0, %v212_v3, 0.0 }
  0x13   : > { %v218_v9 = vrot.slane %v217_v6, 4 }
  0x14   : > { %v224_v7 = vsel %vm216_vm0, %v214_v4, 0.0  ;;  %v235_v8 = vcombine.high %v233_v5, %v233_v5  ;;  %v237_v11 = vsel %vm216_vm0, %v233_v5, 0.0 }
  0x15   : > { %v225_v10 = vrot.slane %v224_v7, 4  ;;  %v219_v13 = vadd.f32 %v218_v9, %v217_v6  ;;  %v238_v14 = vrot.slane %v237_v11, 4 }
  0x16   : > { %v244_v12 = vsel %vm216_vm0, %v235_v8, 0.0 }
  0x17   : > { %v226_v15 = vadd.f32 %v225_v10, %v224_v7  ;;  %v245_v16 = vrot.slane %v244_v12, 4  ;;  %v220_v17 = vrot.slane %v219_v13, 2  ;;  %v239_v18 = vadd.f32 %v238_v14, %v237_v11 }
  0x19   : > { %v227_v19 = vrot.slane %v226_v15, 2  ;;  %v246_v20 = vadd.f32 %v245_v16, %v244_v12  ;;  %v221_v21 = vadd.f32 %v220_v17, %v219_v13  ;;  %v240_v22 = vrot.slane %v239_v18, 2 }
  0x1b   : > { %v228_v23 = vadd.f32 %v227_v19, %v226_v15  ;;  %v247_v24 = vrot.slane %v246_v20, 2  ;;  %v222_v25 = vrot.slane %v221_v21, 1  ;;  %v241_v26 = vadd.f32 %v240_v22, %v239_v18 }
  0x1d   : > { %v229_v27 = vrot.slane %v228_v23, 1  ;;  %v248_v28 = vadd.f32 %v247_v24, %v246_v20  ;;  %v223_v29 = vadd.f32 %v222_v25, %v221_v21  ;;  %v242_v30 = vrot.slane %v241_v26, 1 }
  0x1f   : > { %v230_v31 = vadd.f32 %v229_v27, %v228_v23  ;;  %v249_v32 = vrot.slane %v248_v28, 1  ;;  %v231_v33 = vmul.f32 0.25, %v223_v29  ;;  %v243_v34 = vadd.f32 %v242_v30, %v241_v26 }
  0x21   : > { %v232_v35 = vmul.f32 0.25, %v230_v31  ;;  %v250_v36 = vadd.f32 %v249_v32, %v248_v28  ;;  %v251_v37 = vmul.f32 0.25, %v243_v34  ;;  %v253_v38 = vmul.f32 %v231_v33, %v231_v33 }
  0x23   : > { %v252_v39 = vmul.f32 0.25, %v250_v36  ;;  %v254_v40 = vmul.f32 %v232_v35, %v232_v35  ;;  %v255_v41 = vsub.f32 %v251_v37, %v253_v38  ;;  %v263_v51 = vcombine.low %v231_v33, %v232_v35 }
  0x25   : > { %v256_v42 = vsub.f32 %v252_v39, %v254_v40  ;;  %v257_v43 = vadd.f32 1e-05, %v255_v41  ;;  %v265_v54 = vsub.f32 %v212_v3, %v263_v51 }
  0x27   : > { %v258_v44 = vadd.f32 1e-05, %v256_v42  ;;  %426 = vrsqrt.f32 %v257_v43 }
  0x29   : > { %428 = vrsqrt.f32 %v258_v44 }
  0x31   : > { %v427_v48 = vpop.eup %426 }
  0x33   : > { %v429_v52 = vpop.eup %428 }
  0x34   : > { %v268_v55 = vcombine.low %v427_v48, %v429_v52 }
  0x36   : > { %v270_v57 = vmul.f32 %v268_v55, %v265_v54 }
  0x87   : > { %v274_v56 = vpop.permute.xlu0 %273 }
  0x88   : > { %v281_v58 = vrot.slane %v274_v56, %v280_v53 }
  0x8a   : > { %v283_v60 = vmul.f32 %v281_v58, %v270_v57 }
  0x8b   : > { %v287_v59 = vpop.permute.xlu0 %286 }
  0x8c   : > { %v294_v61 = vrot.slane %v287_v59, %v280_v53 }
  0x8e   : > { %v296_v62 = vadd.f32 %v294_v61, %v283_v60 }
  0x90   : > { %297 = vst [vmem:[%s208_s26] sm:$0xff] %v296_v62 }
  0x91 PF: > { %s13_s14 = sadd.s32 1, %s452_s14   ;;  %s526_s12 = smov %s448_s13 }
  0x92   : > { %p10_p5 = scmp.ge.s32.totalorder %s13_s14, 4   ;;  %s527_s13 = smov %s529_s15 }
  0x94   :  { %12 = sbr.rel (!%p10_p5) target bundleno = 2 (0x2), region = 62 }

</bundles_post_ra>
